<compile_context>
chip_gen: v7x
topology: tpu7x:2x2x1
jax: 0.10.0
libtpu: 0.0.40
codegen_flags: <defaults>
</compile_context>

<pallas_src>
import jax
import jax.numpy as jnp
from jax.experimental import pallas as pl
from jax.experimental.pallas import tpu as pltpu


def _dma_copy_kernel(x_hbm_ref, o_hbm_ref, copy_sem):
    # Direct HBM -> HBM DMA of the whole array; the DMA engine hits the HBM
    # roofline on its own, so no TensorCore compute or VMEM staging is needed.
    copy = pltpu.make_async_copy(x_hbm_ref, o_hbm_ref, copy_sem)
    copy.start()
    copy.wait()


def semantic_embedding_copy(x: jax.Array) -> jax.Array:
    """Explicit materialized copy of `x` via a single HBM->HBM DMA.

    Only use this when a physically distinct output buffer is actually
    required; the module forward itself is a no-op (see
    semantic_embedding_forward). If callers merely need a distinct JAX value,
    prefer buffer donation / input_output_aliases at their own pallas_call —
    zero bytes moved beats any memcpy.
    """
    if x.size == 0:
        # Nothing to move; identity is exact for an empty array.
        return x

    total_bytes = x.size * jnp.dtype(x.dtype).itemsize
    cost = pl.CostEstimate(
        flops=0, transcendentals=0, bytes_accessed=2 * total_bytes
    )

    return pl.pallas_call(
        _dma_copy_kernel,
        out_shape=jax.ShapeDtypeStruct(x.shape, x.dtype),
        in_specs=[pl.BlockSpec(memory_space=pl.ANY)],
        out_specs=pl.BlockSpec(memory_space=pl.ANY),
        scratch_shapes=[pltpu.SemaphoreType.DMA],
        cost_estimate=cost,
    )(x)


def semantic_embedding_forward(x: jax.Array, size: int | None = None) -> jax.Array:
    """Pallas-aware equivalent of SemanticEmbedding(size).forward(x) -> x.

    The PyTorch forward is `return x`; the fastest correct implementation is
    to move zero bytes: no kernel, no HBM round trip. `size` is carried only
    for API parity (used by __len__).
    """
    return x


class SemanticEmbedding:
    """JAX/Pallas mirror of the PyTorch module (no parameters)."""

    def __init__(self, size: int):
        self.size = size

    def __call__(self, x: jax.Array) -> jax.Array:
        return semantic_embedding_forward(x, self.size)

    def __len__(self):
        return self.size


if __name__ == "__main__":
    key = jax.random.PRNGKey(0)
    # Small NCHW input consistent with the module's generic tensor forward.
    x = jax.random.normal(key, (2, 4, 16, 16), dtype=jnp.float32)

    module = SemanticEmbedding(size=8)

    # Hot path: pure identity, zero-cost.
    y = jax.block_until_ready(module(x))
    assert y.shape == x.shape and y.dtype == x.dtype
    assert bool(jnp.array_equal(y, x))

    # Explicit copy path: single HBM->HBM DMA, no VMEM staging, no reshape.
    y_copy = jax.block_until_ready(semantic_embedding_copy(x))
    assert y_copy.shape == x.shape and y_copy.dtype == x.dtype
    assert bool(jnp.array_equal(y_copy, x))

    # Robustness: an odd, non-128-aligned shape goes through the same DMA path
    # (the old lane-dense fallback and its VMEM-limit hazard are gone).
    x_odd = jax.random.normal(jax.random.PRNGKey(1), (3, 5, 7), dtype=jnp.bfloat16)
    y_odd = jax.block_until_ready(semantic_embedding_copy(x_odd))
    assert y_odd.shape == x_odd.shape and y_odd.dtype == x_odd.dtype
    assert bool(jnp.array_equal(y_odd, x_odd))

    assert len(module) == 8
    print("KERNEL_OK")
</pallas_src>

<mosaic_0001>
module attributes {stable_mosaic.version = 11 : i64} {
  func.func @_dma_copy_kernel(%arg0: memref<2x4x16x16xf32, #tpu.memory_space<any>>, %arg1: memref<2x4x16x16xf32, #tpu.memory_space<any>>, %arg2: memref<!tpu.dma_semaphore, #tpu.memory_space<semaphore_mem>>) attributes {dimension_semantics = [], scalar_prefetch = 0 : i64, scratch_operands = 1 : i64, tpu.core_type = #tpu.core_type<tc>} {
    tpu.enqueue_dma source(%arg0 : memref<2x4x16x16xf32, #tpu.memory_space<any>>) target(%arg1 : memref<2x4x16x16xf32, #tpu.memory_space<any>>) target_semaphore(%arg2 : memref<!tpu.dma_semaphore, #tpu.memory_space<semaphore_mem>>)
    tpu.wait_dma2 semaphore(%arg2 : memref<!tpu.dma_semaphore, #tpu.memory_space<semaphore_mem>>) src(%arg0 : memref<2x4x16x16xf32, #tpu.memory_space<any>>) dst(%arg1 : memref<2x4x16x16xf32, #tpu.memory_space<any>>)
    return
  }
}

</mosaic_0001>

<bundles_post_ra>
// kernel: tpu_custom_call.1
= control target key start
LH: loop header
LB: loop body
LE: loop exit
PB: predicated region body
PF: predicated region fallthrough
CT: control target
= control target key end

     0   :  { %s36_s6 = smov [#allocation2]   ;;  %s37_s7 = smov [#allocation3]   ;;  %s55_s0 = inlined_call_operand.hbm [shape: f32[2,4,16,16], index: 0, kind: input, shape index: {}]   ;;  %s56_s1 = inlined_call_operand.hbm [shape: f32[2,4,16,16], index: 1, kind: output, shape index: {}]  }
   0x1   :  { %s38_s8 = smov 0  }
   0x2   :  { %18 = dma.general %s55_s0, 2048, %s56_s1, %s36_s6, %s37_s7, [#allocation4], %s38_s8, 0  }
   0x3   :  { %34 = dma.done.wait [#allocation2], 2048 }
   0x4   :  { %35 = vsyncadd [#allocation2], 4294965248 }
   0x5   :  { %24 = vsyncmov [#allocation2] }
   0x8   :  { %s25_s13 = vpop.sfrf %24 }
   0x9   :  { %p30_p0 = scmp.ne.s32.totalorder %s25_s13, 0 }
   0xb   :  { %29 = shalt.err (%p30_p0)  }

</bundles_post_ra>
